<compile_context>
chip_gen: v7x
topology: tpu7x:2x2x1
jax: 0.10.0
libtpu: 0.0.40
codegen_flags: <defaults>
</compile_context>

<pallas_src>
import functools

import jax
import jax.numpy as jnp
from jax.experimental import pallas as pl
from jax.experimental.pallas import tpu as pltpu


def _round_up(x, m):
    return (x + m - 1) // m * m


def _ws_conv2d_kernel(x_ref, w_ref, b_ref, o_ref):
    # x_ref : (TM, K*K*C_in)       -- activation tile (taps folded into contraction)
    # w_ref : (K*K*C_in, C_pad)    -- scale-folded weights, resident across tiles
    # b_ref : (1, C_pad)           -- f32 bias row
    # o_ref : (TM, C_pad)          -- lane-dense output tile
    y = jnp.dot(x_ref[...], w_ref[...], preferred_element_type=jnp.float32)
    o_ref[...] = (y + b_ref[...]).astype(o_ref.dtype)


def _pick_block_m(m, requested, kkc, c_pad, itemsize, budget_bytes=48 << 20):
    """Largest M-tile (multiple of 8) whose pipelined footprint fits the budget."""
    tm = _round_up(min(requested, _round_up(m, 8)), 8)
    w_bytes = kkc * c_pad * itemsize + c_pad * 4  # weights + bias (fetched once)

    def fits(t):
        act = 2 * t * kkc * itemsize    # double-buffered activation tiles
        out = 2 * t * c_pad * itemsize  # double-buffered output tiles
        acc = t * c_pad * 4             # transient f32 matmul result
        return 2 * w_bytes + act + out + acc <= budget_bytes

    while tm > 8 and not fits(tm):
        tm = max(8, _round_up(tm // 2, 8))
    return tm


@functools.partial(jax.jit, static_argnames=("stride", "padding", "gain", "block_m"))
def ws_conv2d(x_nchw, weight_oihw, bias, *, stride=1, padding=1, gain=2, block_m=512):
    """WSConv2d forward. x_nchw: (N, C_in, H, W); weight_oihw: (C_out, C_in, K, K)."""
    N, C_in, H, W = x_nchw.shape
    C_out, C_in_w, K, K2 = weight_oihw.shape
    assert C_in_w == C_in and K == K2
    assert stride == 1 and padding == K // 2, "kernel specialised to stride=1, 'same' padding"

    dtype = x_nchw.dtype
    itemsize = jnp.dtype(dtype).itemsize
    scale = (gain / (C_in * K * K)) ** 0.5
    M = N * H * W
    KKC = K * K * C_in
    C_pad = _round_up(C_out, 128)  # lane-dense / MXU-width aligned output

    # ---- weights & bias: fold scale, reorder (kh, kw, c_in, c_out), pad C_out ----
    w_col = jnp.transpose(weight_oihw, (2, 3, 1, 0)).reshape(KKC, C_out) * scale
    w_col = jnp.pad(w_col, ((0, 0), (0, C_pad - C_out))).astype(dtype)
    b_col = jnp.pad(bias.astype(jnp.float32), (0, C_pad - C_out)).reshape(1, C_pad)

    # ---- glue: NCHW -> NHWC, zero-pad, im2col with taps folded into contraction ----
    x_nhwc = jnp.transpose(x_nchw, (0, 2, 3, 1))
    x_p = jnp.pad(x_nhwc, ((0, 0), (padding, padding), (padding, padding), (0, 0)))
    taps = [x_p[:, kh:kh + H, kw:kw + W, :] for kh in range(K) for kw in range(K)]
    x_col = jnp.concatenate(taps, axis=-1).reshape(M, KKC)

    # ---- tile M; pad the ragged tail so every tile is full (rows multiple of 8) ----
    tm = _pick_block_m(M, block_m, KKC, C_pad, itemsize)
    m_pad = _round_up(M, tm)
    if m_pad != M:
        x_col = jnp.pad(x_col, ((0, m_pad - M), (0, 0)))

    out = pl.pallas_call(
        _ws_conv2d_kernel,
        out_shape=jax.ShapeDtypeStruct((m_pad, C_pad), dtype),
        grid_spec=pltpu.PrefetchScalarGridSpec(
            num_scalar_prefetch=0,
            grid=(m_pad // tm,),
            in_specs=[
                pl.BlockSpec((tm, KKC), lambda i: (i, 0)),     # activation tile
                pl.BlockSpec((KKC, C_pad), lambda i: (0, 0)),  # weights (constant block)
                pl.BlockSpec((1, C_pad), lambda i: (0, 0)),    # bias
            ],
            out_specs=pl.BlockSpec((tm, C_pad), lambda i: (i, 0)),
        ),
        compiler_params=pltpu.CompilerParams(
            dimension_semantics=("parallel",),  # independent M tiles (2 TCs on v7x)
        ),
    )(x_col, w_col, b_col)

    out = out[:M, :C_out].reshape(N, H, W, C_out)
    return jnp.transpose(out, (0, 3, 1, 2))  # back to NCHW


if __name__ == "__main__":
    # Module config: WSConv2d(in_channels=4, out_channels=8, kernel_size=3, stride=1, padding=1)
    N, C_in, H, W = 2, 4, 16, 16
    C_out, K = 8, 3
    gain = 2

    key = jax.random.PRNGKey(0)
    kx, kw = jax.random.split(key)
    x = jax.random.normal(kx, (N, C_in, H, W), dtype=jnp.float32)
    weight = jax.random.normal(kw, (C_out, C_in, K, K), dtype=jnp.float32)  # nn.init.normal_
    bias = jnp.zeros((C_out,), dtype=jnp.float32)                           # nn.init.zeros_

    # block_m=192 exercises both the multi-tile grid and the ragged-M padding
    # path at this toy size (M = 512 -> 3 tiles of 192 rows, padded tail).
    out = ws_conv2d(x, weight, bias, stride=1, padding=1, gain=gain, block_m=192)
    out = jax.block_until_ready(out)

    # Reference (plain XLA, highest precision) for a correctness sanity check.
    scale = (gain / (C_in * K * K)) ** 0.5
    ref = jax.lax.conv_general_dilated(
        x * scale, weight, window_strides=(1, 1), padding=((1, 1), (1, 1)),
        dimension_numbers=("NCHW", "OIHW", "NCHW"),
        precision=jax.lax.Precision.HIGHEST,
    ) + bias.reshape(1, C_out, 1, 1)

    assert out.shape == (N, C_out, H, W)
    err = float(jnp.max(jnp.abs(out - ref)))
    assert jnp.allclose(out, ref, atol=1e-3, rtol=1e-3), err
    print("KERNEL_OK")
</pallas_src>

<mosaic_0001>
module attributes {stable_mosaic.version = 11 : i64} {
  func.func @_ws_conv2d_kernel(%arg0: i32, %arg1: memref<192x36xf32, #tpu.memory_space<vmem>>, %arg2: memref<36x128xf32, #tpu.memory_space<vmem>>, %arg3: memref<1x128xf32, #tpu.memory_space<vmem>>, %arg4: memref<192x128xf32, #tpu.memory_space<vmem>>) attributes {dimension_semantics = [#tpu.dimension_semantics<parallel>], iteration_bounds = array<i64: 3>, scalar_prefetch = 0 : i64, scratch_operands = 0 : i64, tpu.core_type = #tpu.core_type<tc>, window_params = [{transform_indices = @transform_0, window_bounds = array<i64: 192, 36>}, {pipeline_mode = #tpu.pipeline_mode<synchronous>, transform_indices = @transform_1, window_bounds = array<i64: 36, 128>}, {pipeline_mode = #tpu.pipeline_mode<synchronous>, transform_indices = @transform_2, window_bounds = array<i64: 1, 128>}, {transform_indices = @transform_3, window_bounds = array<i64: 192, 128>}]} {
    %c0 = arith.constant 0 : index
    %c0_0 = arith.constant 0 : index
    %0 = vector.load %arg1[%c0, %c0_0] : memref<192x36xf32, #tpu.memory_space<vmem>>, vector<192x36xf32>
    %c0_1 = arith.constant 0 : index
    %c0_2 = arith.constant 0 : index
    %1 = vector.load %arg2[%c0_1, %c0_2] : memref<36x128xf32, #tpu.memory_space<vmem>>, vector<36x128xf32>
    %cst = arith.constant dense<0.000000e+00> : vector<192x128xf32>
    %2 = tpu.matmul %0, %1, %cst {dimension_numbers = #tpu.dot_dimension_numbers<[1], [0], [0], [1], [0, 0, 1, 1], [], []>} : vector<192x36xf32>, vector<36x128xf32>, vector<192x128xf32> -> vector<192x128xf32>
    %c0_3 = arith.constant 0 : index
    %c0_4 = arith.constant 0 : index
    %3 = vector.load %arg3[%c0_3, %c0_4] : memref<1x128xf32, #tpu.memory_space<vmem>>, vector<1x128xf32>
    %4 = vector.broadcast %3 : vector<1x128xf32> to vector<192x128xf32>
    %5 = arith.addf %2, %4 : vector<192x128xf32>
    %c0_5 = arith.constant 0 : index
    %c0_6 = arith.constant 0 : index
    %6 = vector.load %arg4[%c0_5, %c0_6] : memref<192x128xf32, #tpu.memory_space<vmem>>, vector<192x128xf32>
    tpu.vector_store %arg4[%c0_5, %c0_6], %5 {strides = array<i32>} : memref<192x128xf32, #tpu.memory_space<vmem>>, vector<192x128xf32>,
    return
  }
  func.func @transform_0(%arg0: i32) -> (i32, i32) {
    %c0_i32 = arith.constant 0 : i32
    %c0_i32_0 = arith.constant 0 : i32
    return %arg0, %c0_i32 : i32, i32
  }
  func.func @transform_1(%arg0: i32) -> (i32, i32) {
    %c0_i32 = arith.constant 0 : i32
    %c0_i32_0 = arith.constant 0 : i32
    %c0_i32_1 = arith.constant 0 : i32
    return %c0_i32, %c0_i32_0 : i32, i32
  }
  func.func @transform_2(%arg0: i32) -> (i32, i32) {
    %c0_i32 = arith.constant 0 : i32
    %c0_i32_0 = arith.constant 0 : i32
    %c0_i32_1 = arith.constant 0 : i32
    return %c0_i32, %c0_i32_0 : i32, i32
  }
  func.func @transform_3(%arg0: i32) -> (i32, i32) {
    %c0_i32 = arith.constant 0 : i32
    %c0_i32_0 = arith.constant 0 : i32
    return %arg0, %c0_i32 : i32, i32
  }
}

</mosaic_0001>

<bundles_post_ra>
// kernel: ws_conv2d.1
= control target key start
LH: loop header
LB: loop body
LE: loop exit
PB: predicated region body
PF: predicated region fallthrough
CT: control target
= control target key end

     0   :  { %s712_s12 = smov 0   ;;  %s860_s0 = inlined_call_operand.vmem [shape: f32[576,36], index: 0, kind: input, shape index: {}]   ;;  %s861_s1 = inlined_call_operand.vmem [shape: f32[36,128], index: 1, kind: input, shape index: {}]   ;;  %s862_s2 = inlined_call_operand.vmem [shape: f32[1,128], index: 2, kind: input, shape index: {}]   ;;  %s863_s3 = inlined_call_operand.vmem [shape: f32[576,128], index: 3, kind: output, shape index: {}]  }
   0x1 LB: > { %s552_s13 = sadd.s32 4294967295, %s690_s12   ;;  %p556_p0 = scmp.ge.s32.totalorder %s690_s12, 1  ;;  %s690_s12 = sphi %s712_s12, %s13_s12  }
   0x2   : > { %p138_p1 = scmp.lt.s32.totalorder %s690_s12, 4 }
   0x4   : > { %p139_p2 = pnand %p556_p0, %p138_p1 }
   0x5   : > { %v198_v0 = vld [vmem:[%s861_s1] sm:$0xff] (!%p139_p2)  ;;  %v199_v1 = vld [vmem:[%s861_s1 + $0x8] sm:$0xff] (!%p139_p2)  ;;  %v200_v2 = vld [vmem:[%s861_s1 + $0x10] sm:$0xff] (!%p139_p2)  ;;  %s162_s20 = smul.u32 (!%p139_p2), 24, %s552_s13  ;;  %vm283_vm0 = vcmask (!%p139_p2), 1043456   ;;  %vm210_vm1 = vcmask (!%p139_p2), 293888  }
   0x6   : > { %142 = sbr.rel (%p139_p2) target bundleno = 255 (0xff), region = 32  ;;  %v662_v3 = vpack.c.bf16 (!%p139_p2), %v199_v1, %v198_v0  ;;  %v201_v4 = vld [vmem:[%s861_s1 + $0x18] sm:$0xff] (!%p139_p2)  ;;  %v202_v6 = vld [vmem:[%s861_s1 + $0x20] sm:$0xf] (!%p139_p2) }
   0x7   : > { %v666_v5 = vpack.c.bf16 (!%p139_p2), %v201_v4, %v200_v2  ;;  %p163_p3 = scmp.lt.s32.totalorder (!%p139_p2), %s162_s20, 71  ;;  %v800_v31 = vld [vmem:[%s862_s2] ss:$0 sm:$0xff] (!%p139_p2) }
   0x8   : > { %663 = vmatprep.subr.bf16.mxu0 (!%p139_p2), %v662_v3  ;;  %670 = vmatprep.subr.bf16.mxu1 (!%p139_p2), %v662_v3 }
   0x9   : > { %665 = vmatpush3.bf16.msra.mxu0 (!%p139_p2), %v662_v3  ;;  %673 = vmatpush3.bf16.msra.mxu1 (!%p139_p2), %v662_v3 }
   0xa   : > { %667 = vmatprep.subr.bf16.mxu0 (!%p139_p2), %v666_v5  ;;  %671 = vmatprep.subr.bf16.mxu1 (!%p139_p2), %v666_v5 }
   0xd   : > { %s865_s20 = smov (!%p163_p3, %s162_s20), 71  ;;  %669 = vmatpush3.bf16.msra.mxu0 %v666_v5  ;;  %674 = vmatpush3.bf16.msra.mxu1 %v666_v5 }
   0xe   : > { %s557_s25 = sshll.u32 %s865_s20, 3  ;;  %624 = vmatprep.subr.msk.mxu0 %vm283_vm0, %v202_v6  ;;  %672 = vmatprep.subr.msk.mxu1 %vm283_vm0, %v202_v6 }
   0xf   : > { %s743_s28 = scalar_lea.vmem %s860_s0, %s557_s25  ;;  %s807_s6 = scalar_lea.vmem %s863_s3, %s557_s25 }
  0x10   : > { %v174_v7 = vld [vmem:[%s743_s28] sm:$0xff]  ;;  %v175_v9 = vld [vmem:[%s743_s28 + $0x8] sm:$0xff]  ;;  %v176_v11 = vld [vmem:[%s743_s28 + $0x10] sm:$0xff] }
  0x11   : > { %v186_v8 = vld [vmem:[%s743_s28 + $0x60] sm:$0xff]  ;;  %626 = vmatprep.mubr.msk.f32.mxu0 %vm210_vm1, %v174_v7  ;;  %v187_v10 = vld [vmem:[%s743_s28 + $0x68] sm:$0xff]  ;;  %v188_v12 = vld [vmem:[%s743_s28 + $0x70] sm:$0xff]  ;;  %625 = vmatpush3.msk.msra.mxu0 %vm283_vm0, %v202_v6 }
  0x12   : > { %644 = vmatprep.mubr.msk.f32.mxu1 %vm210_vm1, %v186_v8  ;;  %675 = vmatpush3.msk.msra.mxu1 %vm283_vm0, %v202_v6  ;;  %v177_v13 = vld [vmem:[%s743_s28 + $0x18] sm:$0xff]  ;;  %v178_v15 = vld [vmem:[%s743_s28 + $0x20] sm:$0xff]  ;;  %v179_v17 = vld [vmem:[%s743_s28 + $0x28] sm:$0xff] }
  0x13   : > { %627 = vmatmul.mubr.msk.f32.vlgmr.msra.gmra.mrb[0].mxu0 %vm210_vm1, %v175_v9  ;;  %645 = vmatmul.mubr.msk.f32.vlgmr.msra.gmra.mrb[0].mxu1 %vm210_vm1, %v187_v10  ;;  %v189_v14 = vld [vmem:[%s743_s28 + $0x78] sm:$0xff]  ;;  %v190_v16 = vld [vmem:[%s743_s28 + $0x80] sm:$0xff]  ;;  %v191_v18 = vld [vmem:[%s743_s28 + $0x88] sm:$0xff] }
  0x14   : > { %629 = vmatprep.mubr.msk.f32.mxu0 %vm210_vm1, %v176_v11  ;;  %647 = vmatprep.mubr.msk.f32.mxu1 %vm210_vm1, %v188_v12  ;;  %v180_v19 = vld [vmem:[%s743_s28 + $0x30] sm:$0xff]  ;;  %v181_v21 = vld [vmem:[%s743_s28 + $0x38] sm:$0xff]  ;;  %v182_v23 = vld [vmem:[%s743_s28 + $0x40] sm:$0xff] }
  0x15   : > { %v192_v20 = vld [vmem:[%s743_s28 + $0x90] sm:$0xff]  ;;  %v193_v22 = vld [vmem:[%s743_s28 + $0x98] sm:$0xff]  ;;  %v194_v24 = vld [vmem:[%s743_s28 + $0xa0] sm:$0xff] }
  0x16   : > { %v183_v25 = vld [vmem:[%s743_s28 + $0x48] sm:$0xff]  ;;  %v184_v27 = vld [vmem:[%s743_s28 + $0x50] sm:$0xff]  ;;  %v185_v29 = vld [vmem:[%s743_s28 + $0x58] sm:$0xff] }
  0x17   : > { %630 = vmatmul.mubr.msk.f32.gmra.mrb[2].mxu0 %vm210_vm1, %v177_v13  ;;  %648 = vmatmul.mubr.msk.f32.gmra.mrb[2].mxu1 %vm210_vm1, %v189_v14  ;;  %v195_v26 = vld [vmem:[%s743_s28 + $0xa8] sm:$0xff]  ;;  %v196_v28 = vld [vmem:[%s743_s28 + $0xb0] sm:$0xff]  ;;  %v197_v30 = vld [vmem:[%s743_s28 + $0xb8] sm:$0xff] }
  0x18   : > { %632 = vmatprep.mubr.msk.f32.mxu0 %vm210_vm1, %v178_v15  ;;  %650 = vmatprep.mubr.msk.f32.mxu1 %vm210_vm1, %v190_v16 }
  0x1b   : > { %633 = vmatmul.mubr.msk.f32.gmra.mrb[4].mxu0 %vm210_vm1, %v179_v17  ;;  %651 = vmatmul.mubr.msk.f32.gmra.mrb[4].mxu1 %vm210_vm1, %v191_v18 }
  0x1c   : > { %635 = vmatprep.mubr.msk.f32.mxu0 %vm210_vm1, %v180_v19  ;;  %653 = vmatprep.mubr.msk.f32.mxu1 %vm210_vm1, %v192_v20 }
  0x1f   : > { %636 = vmatmul.mubr.msk.f32.gmra.mrb[6].mxu0 %vm210_vm1, %v181_v21  ;;  %654 = vmatmul.mubr.msk.f32.gmra.mrb[6].mxu1 %vm210_vm1, %v193_v22 }
  0x20   : > { %638 = vmatprep.mubr.msk.f32.mxu0 %vm210_vm1, %v182_v23  ;;  %656 = vmatprep.mubr.msk.f32.mxu1 %vm210_vm1, %v194_v24 }
  0x23   : > { %639 = vmatmul.mubr.msk.f32.gmra.mrb[8].mxu0 %vm210_vm1, %v183_v25  ;;  %657 = vmatmul.mubr.msk.f32.gmra.mrb[8].mxu1 %vm210_vm1, %v195_v26 }
  0x24   : > { %641 = vmatprep.mubr.msk.f32.mxu0 %vm210_vm1, %v184_v27  ;;  %659 = vmatprep.mubr.msk.f32.mxu1 %vm210_vm1, %v196_v28 }
  0x27   : > { %642 = vmatmul.mubr.msk.f32.gmra.mrb[10].mxu0 %vm210_vm1, %v185_v29  ;;  %660 = vmatmul.mubr.msk.f32.gmra.mrb[10].mxu1 %vm210_vm1, %v197_v30 }
  0xe6   : > { %v628_v32 = vpop.f32.mrb[0].mxu0  ;;  %v646_v33 = vpop.f32.mrb[0].mxu1 }
  0xe7   : > { %v359_v34 = vadd.f32 %v628_v32, %v800_v31  ;;  %v419_v35 = vadd.f32 %v646_v33, %v800_v31  ;;  %v353_v36 = vpop.f32.mrb[1].mxu0  ;;  %v413_v37 = vpop.f32.mrb[1].mxu1 }
  0xe8   : > { %v354_v38 = vadd.f32 %v800_v31, %v353_v36  ;;  %v414_v39 = vadd.f32 %v800_v31, %v413_v37 }
  0xe9   : > { %473 = vst [vmem:[%s807_s6 + $0x8] sm:$0xff] %v359_v34  ;;  %485 = vst [vmem:[%s807_s6 + $0x68] sm:$0xff] %v419_v35 }
  0xea   : > { %472 = vst [vmem:[%s807_s6] sm:$0xff] %v354_v38  ;;  %484 = vst [vmem:[%s807_s6 + $0x60] sm:$0xff] %v414_v39  ;;  %v631_v40 = vpop.f32.mrb[2].mxu0  ;;  %v649_v41 = vpop.f32.mrb[2].mxu1 }
  0xeb   : > { %v369_v42 = vadd.f32 %v631_v40, %v800_v31  ;;  %v429_v43 = vadd.f32 %v649_v41, %v800_v31  ;;  %v363_v44 = vpop.f32.mrb[3].mxu0  ;;  %v423_v45 = vpop.f32.mrb[3].mxu1 }
  0xec   : > { %v364_v46 = vadd.f32 %v800_v31, %v363_v44  ;;  %v424_v47 = vadd.f32 %v800_v31, %v423_v45 }
  0xed   : > { %475 = vst [vmem:[%s807_s6 + $0x18] sm:$0xff] %v369_v42  ;;  %487 = vst [vmem:[%s807_s6 + $0x78] sm:$0xff] %v429_v43 }
  0xee   : > { %474 = vst [vmem:[%s807_s6 + $0x10] sm:$0xff] %v364_v46  ;;  %486 = vst [vmem:[%s807_s6 + $0x70] sm:$0xff] %v424_v47  ;;  %v634_v48 = vpop.f32.mrb[4].mxu0  ;;  %v652_v49 = vpop.f32.mrb[4].mxu1 }
  0xef   : > { %v379_v50 = vadd.f32 %v634_v48, %v800_v31  ;;  %v439_v51 = vadd.f32 %v652_v49, %v800_v31  ;;  %v373_v52 = vpop.f32.mrb[5].mxu0  ;;  %v433_v53 = vpop.f32.mrb[5].mxu1 }
  0xf0   : > { %v374_v54 = vadd.f32 %v800_v31, %v373_v52  ;;  %v434_v55 = vadd.f32 %v800_v31, %v433_v53 }
  0xf1   : > { %477 = vst [vmem:[%s807_s6 + $0x28] sm:$0xff] %v379_v50  ;;  %489 = vst [vmem:[%s807_s6 + $0x88] sm:$0xff] %v439_v51 }
  0xf2   : > { %476 = vst [vmem:[%s807_s6 + $0x20] sm:$0xff] %v374_v54  ;;  %488 = vst [vmem:[%s807_s6 + $0x80] sm:$0xff] %v434_v55  ;;  %v637_v56 = vpop.f32.mrb[6].mxu0  ;;  %v655_v57 = vpop.f32.mrb[6].mxu1 }
  0xf3   : > { %v389_v58 = vadd.f32 %v637_v56, %v800_v31  ;;  %v449_v59 = vadd.f32 %v655_v57, %v800_v31  ;;  %v383_v60 = vpop.f32.mrb[7].mxu0  ;;  %v443_v61 = vpop.f32.mrb[7].mxu1 }
  0xf4   : > { %v384_v62 = vadd.f32 %v800_v31, %v383_v60  ;;  %v444_v63 = vadd.f32 %v800_v31, %v443_v61 }
  0xf5   : > { %479 = vst [vmem:[%s807_s6 + $0x38] sm:$0xff] %v389_v58  ;;  %491 = vst [vmem:[%s807_s6 + $0x98] sm:$0xff] %v449_v59 }
  0xf6   : > { %478 = vst [vmem:[%s807_s6 + $0x30] sm:$0xff] %v384_v62  ;;  %490 = vst [vmem:[%s807_s6 + $0x90] sm:$0xff] %v444_v63  ;;  %v640_v0 = vpop.f32.mrb[8].mxu0  ;;  %v658_v1 = vpop.f32.mrb[8].mxu1 }
  0xf7   : > { %v399_v2 = vadd.f32 %v640_v0, %v800_v31  ;;  %v459_v3 = vadd.f32 %v658_v1, %v800_v31  ;;  %v393_v4 = vpop.f32.mrb[9].mxu0  ;;  %v453_v5 = vpop.f32.mrb[9].mxu1 }
  0xf8   : > { %v394_v6 = vadd.f32 %v800_v31, %v393_v4  ;;  %v454_v7 = vadd.f32 %v800_v31, %v453_v5 }
  0xf9   : > { %481 = vst [vmem:[%s807_s6 + $0x48] sm:$0xff] %v399_v2  ;;  %493 = vst [vmem:[%s807_s6 + $0xa8] sm:$0xff] %v459_v3 }
  0xfa   : > { %480 = vst [vmem:[%s807_s6 + $0x40] sm:$0xff] %v394_v6  ;;  %492 = vst [vmem:[%s807_s6 + $0xa0] sm:$0xff] %v454_v7  ;;  %v643_v8 = vpop.f32.mrb[10].mxu0  ;;  %v661_v9 = vpop.f32.mrb[10].mxu1 }
  0xfb   : > { %v409_v10 = vadd.f32 %v643_v8, %v800_v31  ;;  %v469_v11 = vadd.f32 %v661_v9, %v800_v31  ;;  %v403_v12 = vpop.f32.mrb[11].mxu0  ;;  %v463_v13 = vpop.f32.mrb[11].mxu1 }
  0xfc   : > { %v404_v14 = vadd.f32 %v800_v31, %v403_v12  ;;  %v464_v15 = vadd.f32 %v800_v31, %v463_v13 }
  0xfd   : > { %483 = vst [vmem:[%s807_s6 + $0x58] sm:$0xff] %v409_v10  ;;  %495 = vst [vmem:[%s807_s6 + $0xb8] sm:$0xff] %v469_v11 }
  0xfe   : > { %482 = vst [vmem:[%s807_s6 + $0x50] sm:$0xff] %v404_v14  ;;  %494 = vst [vmem:[%s807_s6 + $0xb0] sm:$0xff] %v464_v15 }
  0xff PF: > { %s13_s12 = sadd.s32 1, %s690_s12  }
 0x100   : > { %p10_p4 = scmp.ge.s32.totalorder %s13_s12, 5  }
 0x102   :  { %12 = sbr.rel (!%p10_p4) target bundleno = 1 (0x1), region = 62 }

</bundles_post_ra>
